<compile_context>
chip_gen: v7x
topology: tpu7x:2x2x1
jax: 0.10.0
libtpu: 0.0.40
codegen_flags: <defaults>
</compile_context>

<pallas_src>
import functools

import jax
import jax.numpy as jnp
from jax.experimental import pallas as pl
from jax.experimental.pallas import tpu as pltpu

_INV_SQRT2 = 0.7071067811865476


def _round_up(x, m):
    return ((x + m - 1) // m) * m


def _fused_conv_gelu_maxpool_kernel(x_ref, w_ref, b_ref, vl_ref, o_ref, *,
                                    k_max, l_out):
    """All branches fused: im2col conv1d -> exact GELU -> masked global max.

    x_ref : (TB, Lp, Cin)   channels-last, time zero-padded to Lp
    w_ref : (k_max*Cin, C_pad)  fused, tap-padded, lane-padded weight
    b_ref : (1, C_pad)          fused bias
    vl_ref: (1, C_pad) int32    per-channel valid time length (L - k + 1)
    o_ref : (TB, C_pad)         lane-dense output (padding sliced off outside)
    """
    TB, Lp, Cin = x_ref.shape
    KC, C_pad = w_ref.shape

    # Hoisted casts: once per tile, not per tap.
    x = x_ref[...].astype(jnp.float32)
    w = w_ref[...].astype(jnp.float32)
    bias = b_ref[...].astype(jnp.float32)          # (1, C_pad)

    # im2col: concatenate the k_max shifted time windows along the lane axis,
    # then collapse (TB, l_out) into the matmul M dimension.
    cols = [x[:, j:j + l_out, :] for j in range(k_max)]
    xim = jnp.concatenate(cols, axis=-1).reshape(TB * l_out, KC)

    # One MXU matmul covers every branch and every tap at once.
    acc = jnp.dot(xim, w, preferred_element_type=jnp.float32) + bias

    # Exact GELU (erf form), matching torch.nn.functional.gelu default.
    y = 0.5 * acc * (1.0 + jax.lax.erf(acc * _INV_SQRT2))
    y = y.reshape(TB, l_out, C_pad)

    # Per-channel valid-length mask (branches with smaller k have more valid
    # positions), then AdaptiveMaxPool1d(1) == max over time.
    t_idx = jax.lax.broadcasted_iota(jnp.int32, (l_out, C_pad), 0)
    valid = t_idx < vl_ref[...]                    # (l_out, C_pad)
    y = jnp.where(valid[None], y, -jnp.inf)
    o_ref[...] = jnp.max(y, axis=1).astype(o_ref.dtype)


def init_params(key, num_channels, kernel_sizes, glove_dim):
    """Deterministic kaiming_uniform_ weights (a=0 -> gain=sqrt(2)), zero bias.

    Returns per-branch params in PyTorch Conv1d layout: (Cout, Cin, k), (Cout,).
    """
    params = []
    for c, k in zip(num_channels, kernel_sizes):
        key, sub = jax.random.split(key)
        fan_in = glove_dim * k
        bound = jnp.sqrt(2.0) * jnp.sqrt(3.0 / fan_in)
        w = jax.random.uniform(sub, (c, glove_dim, k), jnp.float32,
                               minval=-bound, maxval=bound)
        b = jnp.zeros((c,), jnp.float32)           # nn.init.uniform_(bias, 0, 0)
        params.append((w, b))
    return params


def prepare_fused_params(params, *, lane_multiple=128):
    """Fuse all branch weights/biases into one lane-dense set (done once)."""
    cin = int(params[0][0].shape[1])
    k_sizes = [int(w.shape[2]) for w, _ in params]
    k_max, k_min = max(k_sizes), min(k_sizes)
    sum_c = int(sum(int(w.shape[0]) for w, _ in params))
    c_pad = max(lane_multiple, _round_up(sum_c, lane_multiple))

    ws, bs, ks = [], [], []
    for (w_oik, b), k in zip(params, k_sizes):
        w_kic = jnp.transpose(w_oik, (2, 1, 0))                    # (k, Cin, c)
        w_kic = jnp.pad(w_kic, ((0, k_max - k), (0, 0), (0, 0)))   # zero extra taps
        ws.append(w_kic)
        bs.append(b)
        ks.append(jnp.full((int(w_oik.shape[0]),), k, jnp.int32))
    w = jnp.concatenate(ws, axis=2)                # (k_max, Cin, sum_c)
    b = jnp.concatenate(bs)                        # (sum_c,)
    kk = jnp.concatenate(ks)                       # per-channel kernel size

    pad = c_pad - sum_c                            # lane padding (zero W & bias)
    w = jnp.pad(w, ((0, 0), (0, 0), (0, pad)))
    b = jnp.pad(b, (0, pad))
    kk = jnp.pad(kk, (0, pad), constant_values=k_max)

    return dict(
        w2d=w.reshape(k_max * cin, c_pad).astype(jnp.float32),
        bias=b.reshape(1, c_pad).astype(jnp.float32),
        ksizes=kk.reshape(1, c_pad),
        k_max=k_max, k_min=k_min, sum_c=sum_c, c_pad=c_pad, cin=cin)


def _pick_batch_tile(batch):
    # Output blocks need their second-to-last dim 8-aligned (or the full batch).
    # 8 rows/step is enough for the demo and keeps the double-buffered x tile
    # far below even v7x's 64 MiB VMEM; grow this for long sequences until
    # 2 * (TB*Lp*Cin*4B) approaches ~half the scoped VMEM limit.
    return 8 if batch % 8 == 0 else batch


def cnn_layers_forward(x_ncl, fused):
    """x_ncl: (B, glove_dim, L) NCL like PyTorch. Returns (B, sum(num_channels))."""
    B, cin, L = x_ncl.shape
    k_max, k_min = fused["k_max"], fused["k_min"]
    c_pad, sum_c = fused["c_pad"], fused["sum_c"]
    l_out = L - k_min + 1                       # widest branch's output length
    lp = l_out + k_max - 1                      # time extent the im2col reads

    # Host-side glue: NCL -> channels-last (+ zero time pad for the widest tap
    # reach).  A channels-last producer upstream would eliminate this pass.
    x_blc = jnp.transpose(x_ncl, (0, 2, 1))
    if lp > L:
        x_blc = jnp.pad(x_blc, ((0, 0), (0, lp - L), (0, 0)))

    valid_len = jnp.minimum(L - fused["ksizes"] + 1, l_out).astype(jnp.int32)

    tb = _pick_batch_tile(B)
    grid = (B // tb,)
    kern = functools.partial(_fused_conv_gelu_maxpool_kernel,
                             k_max=k_max, l_out=l_out)
    out_padded = pl.pallas_call(
        kern,
        out_shape=jax.ShapeDtypeStruct((B, c_pad), x_ncl.dtype),
        grid=grid,
        in_specs=[
            pl.BlockSpec((tb, lp, cin), lambda i: (i, 0, 0)),
            pl.BlockSpec((k_max * cin, c_pad), lambda i: (0, 0)),
            pl.BlockSpec((1, c_pad), lambda i: (0, 0)),
            pl.BlockSpec((1, c_pad), lambda i: (0, 0)),
        ],
        out_specs=pl.BlockSpec((tb, c_pad), lambda i: (i, 0)),
        compiler_params=pltpu.CompilerParams(
            dimension_semantics=("parallel",)),
    )(x_blc, fused["w2d"], fused["bias"], valid_len)

    return out_padded[:, :sum_c]                # slice off lane padding


def _reference_forward(x_ncl, params):
    """Pure-JAX per-branch reference for validation."""
    x_blc = jnp.transpose(x_ncl, (0, 2, 1)).astype(jnp.float32)
    B, L, _ = x_blc.shape
    outs = []
    for (w_oik, b) in params:
        cout, cin, k = w_oik.shape
        w_kic = jnp.transpose(w_oik, (2, 1, 0))
        l_out = L - k + 1
        acc = jnp.zeros((B, l_out, cout), jnp.float32)
        for j in range(k):
            acc = acc + jnp.einsum('bld,dc->blc', x_blc[:, j:j + l_out, :], w_kic[j])
        acc = acc + b[None, None, :]
        y = 0.5 * acc * (1.0 + jax.lax.erf(acc * _INV_SQRT2))
        outs.append(jnp.max(y, axis=1))
    return jnp.concatenate(outs, axis=1)


if __name__ == "__main__":
    # Small shapes consistent with the module's forward: two conv branches,
    # glove_dim=32, seq L=8.  B=16 (8-aligned) so the batch-tiled, "parallel"
    # grid actually runs multiple pipelined steps.
    num_channels = (4, 6)
    kernel_sizes = (3, 4)
    glove_dim = 32
    B, L = 16, 8

    key = jax.random.PRNGKey(0)
    key, kx = jax.random.split(key)
    x = jax.random.normal(kx, (B, glove_dim, L), dtype=jnp.float32)

    params = init_params(key, num_channels, kernel_sizes, glove_dim)
    fused = prepare_fused_params(params)

    out = jax.block_until_ready(cnn_layers_forward(x, fused))
    ref = jax.block_until_ready(_reference_forward(x, params))

    assert out.shape == (B, sum(num_channels)), out.shape
    assert jnp.allclose(out, ref, atol=1e-5, rtol=1e-5), "mismatch vs reference"

    print("KERNEL_OK")
</pallas_src>

<mosaic_0001>
module attributes {stable_mosaic.version = 11 : i64} {
  func.func @_fused_conv_gelu_maxpool_kernel(%arg0: i32, %arg1: memref<8x9x32xf32, #tpu.memory_space<vmem>>, %arg2: memref<128x128xf32, #tpu.memory_space<vmem>>, %arg3: memref<1x128xf32, #tpu.memory_space<vmem>>, %arg4: memref<1x128xi32, #tpu.memory_space<vmem>>, %arg5: memref<8x128xf32, #tpu.memory_space<vmem>>) attributes {dimension_semantics = [#tpu.dimension_semantics<parallel>], iteration_bounds = array<i64: 2>, scalar_prefetch = 0 : i64, scratch_operands = 0 : i64, tpu.core_type = #tpu.core_type<tc>, window_params = [{transform_indices = @transform_0, window_bounds = array<i64: 8, 9, 32>}, {pipeline_mode = #tpu.pipeline_mode<synchronous>, transform_indices = @transform_1, window_bounds = array<i64: 128, 128>}, {pipeline_mode = #tpu.pipeline_mode<synchronous>, transform_indices = @transform_2, window_bounds = array<i64: 1, 128>}, {pipeline_mode = #tpu.pipeline_mode<synchronous>, transform_indices = @transform_3, window_bounds = array<i64: 1, 128>}, {transform_indices = @transform_4, window_bounds = array<i64: 8, 128>}]} {
    %c0 = arith.constant 0 : index
    %c0_0 = arith.constant 0 : index
    %c0_1 = arith.constant 0 : index
    %0 = vector.load %arg1[%c0, %c0_0, %c0_1] : memref<8x9x32xf32, #tpu.memory_space<vmem>>, vector<8x9x32xf32>
    %c0_2 = arith.constant 0 : index
    %c0_3 = arith.constant 0 : index
    %1 = vector.load %arg2[%c0_2, %c0_3] : memref<128x128xf32, #tpu.memory_space<vmem>>, vector<128x128xf32>
    %c0_4 = arith.constant 0 : index
    %c0_5 = arith.constant 0 : index
    %2 = vector.load %arg3[%c0_4, %c0_5] : memref<1x128xf32, #tpu.memory_space<vmem>>, vector<1x128xf32>
    %3 = vector.extract_strided_slice %0 {offsets = [0, 0, 0], sizes = [8, 6, 32], strides = [1, 1, 1]} : vector<8x9x32xf32> to vector<8x6x32xf32>
    %4 = vector.extract_strided_slice %0 {offsets = [0, 1, 0], sizes = [8, 6, 32], strides = [1, 1, 1]} : vector<8x9x32xf32> to vector<8x6x32xf32>
    %5 = vector.extract_strided_slice %0 {offsets = [0, 2, 0], sizes = [8, 6, 32], strides = [1, 1, 1]} : vector<8x9x32xf32> to vector<8x6x32xf32>
    %6 = vector.extract_strided_slice %0 {offsets = [0, 3, 0], sizes = [8, 6, 32], strides = [1, 1, 1]} : vector<8x9x32xf32> to vector<8x6x32xf32>
    %7 = tpu.concatenate %3, %4, %5, %6 in 2 : vector<8x6x32xf32>, vector<8x6x32xf32>, vector<8x6x32xf32>, vector<8x6x32xf32> -> vector<8x6x128xf32>
    %8 = vector.shape_cast %7 : vector<8x6x128xf32> to vector<48x128xf32>
    %cst = arith.constant dense<0.000000e+00> : vector<48x128xf32>
    %9 = tpu.matmul %8, %1, %cst {dimension_numbers = #tpu.dot_dimension_numbers<[1], [0], [0], [1], [0, 0, 1, 1], [], []>} : vector<48x128xf32>, vector<128x128xf32>, vector<48x128xf32> -> vector<48x128xf32>
    %10 = vector.broadcast %2 : vector<1x128xf32> to vector<48x128xf32>
    %11 = arith.addf %9, %10 : vector<48x128xf32>
    %cst_6 = arith.constant 5.000000e-01 : f32
    %12 = vector.broadcast %cst_6 : f32 to vector<48x128xf32>
    %13 = arith.mulf %12, %11 : vector<48x128xf32>
    %cst_7 = arith.constant 0.707106769 : f32
    %14 = vector.broadcast %cst_7 : f32 to vector<48x128xf32>
    %15 = arith.mulf %11, %14 : vector<48x128xf32>
    %16 = math.erf %15 : vector<48x128xf32>
    %cst_8 = arith.constant 1.000000e+00 : f32
    %17 = vector.broadcast %cst_8 : f32 to vector<48x128xf32>
    %18 = arith.addf %17, %16 : vector<48x128xf32>
    %19 = arith.mulf %13, %18 : vector<48x128xf32>
    %20 = vector.shape_cast %19 : vector<48x128xf32> to vector<8x6x128xf32>
    %21 = tpu.iota {dimensions = array<i32: 0>} : vector<6x128xi32>
    %c0_9 = arith.constant 0 : index
    %c0_10 = arith.constant 0 : index
    %22 = vector.load %arg4[%c0_9, %c0_10] : memref<1x128xi32, #tpu.memory_space<vmem>>, vector<1x128xi32>
    %23 = vector.broadcast %22 : vector<1x128xi32> to vector<6x128xi32>
    %24 = arith.cmpi slt, %21, %23 : vector<6x128xi32>
    %25 = vector.shape_cast %24 : vector<6x128xi1> to vector<1x6x128xi1>
    %cst_11 = arith.constant 0xFF800000 : f32
    %26 = vector.shape_cast %25 : vector<1x6x128xi1> to vector<1x6x128xi1>
    %27 = vector.broadcast %26 : vector<1x6x128xi1> to vector<8x6x128xi1>
    %28 = vector.broadcast %cst_11 : f32 to vector<8x6x128xf32>
    %29 = arith.select %27, %20, %28 : vector<8x6x128xi1>, vector<8x6x128xf32>
    %cst_12 = arith.constant dense<0xFF800000> : vector<8x128xf32>
    %30 = vector.multi_reduction <maximumf>, %29, %cst_12 [1] : vector<8x6x128xf32> to vector<8x128xf32>
    %c0_13 = arith.constant 0 : index
    %c0_14 = arith.constant 0 : index
    %31 = vector.load %arg5[%c0_13, %c0_14] : memref<8x128xf32, #tpu.memory_space<vmem>>, vector<8x128xf32>
    tpu.vector_store %arg5[%c0_13, %c0_14], %30 {strides = array<i32>} : memref<8x128xf32, #tpu.memory_space<vmem>>, vector<8x128xf32>,
    return
  }
  func.func @transform_0(%arg0: i32) -> (i32, i32, i32) {
    %c0_i32 = arith.constant 0 : i32
    %c0_i32_0 = arith.constant 0 : i32
    %c0_i32_1 = arith.constant 0 : i32
    return %arg0, %c0_i32, %c0_i32_0 : i32, i32, i32
  }
  func.func @transform_1(%arg0: i32) -> (i32, i32) {
    %c0_i32 = arith.constant 0 : i32
    %c0_i32_0 = arith.constant 0 : i32
    %c0_i32_1 = arith.constant 0 : i32
    return %c0_i32, %c0_i32_0 : i32, i32
  }
  func.func @transform_2(%arg0: i32) -> (i32, i32) {
    %c0_i32 = arith.constant 0 : i32
    %c0_i32_0 = arith.constant 0 : i32
    %c0_i32_1 = arith.constant 0 : i32
    return %c0_i32, %c0_i32_0 : i32, i32
  }
  func.func @transform_3(%arg0: i32) -> (i32, i32) {
    %c0_i32 = arith.constant 0 : i32
    %c0_i32_0 = arith.constant 0 : i32
    %c0_i32_1 = arith.constant 0 : i32
    return %c0_i32, %c0_i32_0 : i32, i32
  }
  func.func @transform_4(%arg0: i32) -> (i32, i32) {
    %c0_i32 = arith.constant 0 : i32
    %c0_i32_0 = arith.constant 0 : i32
    return %arg0, %c0_i32 : i32, i32
  }
}

</mosaic_0001>

<bundles_post_ra>
// kernel: tpu_custom_call.1
= control target key start
LH: loop header
LB: loop body
LE: loop exit
PB: predicated region body
PF: predicated region fallthrough
CT: control target
= control target key end

     0   :  { %9 = vsyncpa [#allocation3], 0  ;;  %s1826_s0 = inlined_call_operand.vmem [shape: f32[16,9,32], index: 0, kind: input, shape index: {}]   ;;  %s1827_s1 = inlined_call_operand.vmem [shape: f32[128,128], index: 1, kind: input, shape index: {}]   ;;  %s1828_s2 = inlined_call_operand.vmem [shape: f32[1,128], index: 2, kind: input, shape index: {}]   ;;  %s1829_s3 = inlined_call_operand.vmem [shape: s32[1,128], index: 3, kind: input, shape index: {}]   ;;  %s1830_s4 = inlined_call_operand.hbm [shape: f32[16,128], index: 4, kind: output, shape index: {}]  }
   0x1   :  { %11 = vsyncpa [#allocation3 + $0x1], 0  ;;  %s1456_s15 = smov 0   ;;  %s1458_s16 = smov 0  }
   0x2   :  { %s1460_s17 = smov 0   ;;  %s1462_s18 = smov 0  }
   0x3 LB: > { %s1477_s19 = sadd.s32 4294967295, %s1424_s18   ;;  %s1181_s20 = sadd.s32 4294967294, %s1424_s18   ;;  %s1424_s18 = sphi %s1462_s18, %s1838_s18   ;;  %s1420_s17 = sphi %s1460_s17, %s1837_s17   ;;  %s1416_s16 = sphi %s1458_s16, %s1836_s16   ;;  %s1412_s15 = sphi %s1456_s15, %s1835_s15  }
   0x4   : > { %s1481_s21 = sadd.s32 1, %s1424_s18   ;;  %s113_s22 = sadd.s32 1, %s1420_s17 }
   0x5   : > { %s110_s23 = ssub.s32 %s1424_s18, %s1481_s21  ;;  %p123_p0 = scmp.ne.s32.totalorder %s1420_s17, %s1416_s16 }
   0x6   : > { %p111_p1 = scmp.eq.s32.totalorder %s110_s23, 0  ;;  %p124_p2 = scmp.eq.s32.totalorder %s1477_s19, 1 }
   0x7   : > { %p129_p3 = scmp.ne.s32.totalorder %s1416_s16, %s1412_s15  ;;  %p130_p4 = scmp.eq.s32.totalorder %s1181_s20, 1 }
   0x8   : > { %s1492_s24 = scalar_select %p111_p1, %s1420_s17, %s113_s22  }
   0x9   : > { %p1494_p5 = por %p124_p2, %p123_p0  ;;  %p1498_p6 = por %p130_p4, %p129_p3 }
   0xa   : > { %p1184_p7 = scmp.ge.s32.totalorder %s1424_s18, 1  ;;  %p167_p8 = scmp.lt.s32.totalorder %s1424_s18, 3 }
   0xc   : > { %p168_p9 = pnand %p1184_p7, %p167_p8 }
   0xd   : > { %s1186_s27 = sshll.u32 (!%p168_p9), %s1477_s19, 3  ;;  %v217_v0 = vld [vmem:[%s1827_s1] sm:$0xff] (!%p168_p9)  ;;  %v218_v1 = vld [vmem:[%s1827_s1 + $0x8] sm:$0xff] (!%p168_p9)  ;;  %v219_v3 = vld [vmem:[%s1827_s1 + $0x10] sm:$0xff] (!%p168_p9)  ;;  %vm314_vm0 = vcmask (!%p168_p9), 1044480   ;;  %s1428_s30 = smov (!%p168_p9), 96  }
   0xe   : > { %171 = sbr.rel (%p168_p9) target bundleno = 477 (0x1dd), region = 36  ;;  %p195_p10 = scmp.lt.s32.totalorder (!%p168_p9), %s1186_s27, 15  ;;  %v1259_v2 = vpack.c.bf16 (!%p168_p9), %v218_v1, %v217_v0  ;;  %v220_v4 = vld [vmem:[%s1827_s1 + $0x18] sm:$0xff] (!%p168_p9)  ;;  %v221_v6 = vld [vmem:[%s1827_s1 + $0x20] sm:$0xff] (!%p168_p9)  ;;  %v222_v7 = vld [vmem:[%s1827_s1 + $0x28] sm:$0xff] (!%p168_p9)  ;;  %vm363_vm1 = vcmask (!%p168_p9), 261120  }
   0xf   : > { %v1263_v5 = vpack.c.bf16 (!%p168_p9), %v220_v4, %v219_v3  ;;  %v1267_v8 = vpack.c.bf16 (!%p168_p9), %v222_v7, %v221_v6  ;;  %v223_v20 = vld [vmem:[%s1827_s1 + $0x30] sm:$0xff] (!%p168_p9)  ;;  %v224_v22 = vld [vmem:[%s1827_s1 + $0x38] sm:$0xff] (!%p168_p9)  ;;  %v225_v23 = vld [vmem:[%s1827_s1 + $0x40] sm:$0xff] (!%p168_p9)  ;;  %vm372_vm2 = vcmask (!%p168_p9), 523264   ;;  %vm381_vm3 = vcmask (!%p168_p9), 785408   ;;  %s191_s11 = sand.u32 (!%p168_p9), 1, %s1416_s16  }
  0x10   : > { %1260 = vmatprep.subr.bf16.mxu0 (!%p168_p9), %v1259_v2  ;;  %1291 = vmatprep.subr.bf16.mxu1 (!%p168_p9), %v1259_v2  ;;  %v1271_v24 = vpack.c.bf16 (!%p168_p9), %v224_v22, %v223_v20  ;;  %v226_v25 = vld [vmem:[%s1827_s1 + $0x48] sm:$0xff] (!%p168_p9)  ;;  %v227_v29 = vld [vmem:[%s1827_s1 + $0x50] sm:$0xff] (!%p168_p9)  ;;  %v228_v30 = vld [vmem:[%s1827_s1 + $0x58] sm:$0xff] (!%p168_p9)  ;;  %vm1027_vm5 = vcmask (!%p168_p9), 1045504   ;;  %vm1092_vm6 = vcmask (!%p168_p9), 1041409   ;;  %vm1094_vm7 = vcmask (!%p168_p9), 1042434  }
  0x11   : > { %1262 = vmatpush3.bf16.msra.mxu0 (!%p168_p9), %v1259_v2  ;;  %1299 = vmatpush3.bf16.msra.mxu1 (!%p168_p9), %v1259_v2  ;;  %v1275_v28 = vpack.c.bf16 (!%p168_p9), %v226_v25, %v225_v23  ;;  %v1279_v34 = vpack.c.bf16 (!%p168_p9), %v228_v30, %v227_v29  ;;  %v229_v36 = vld [vmem:[%s1827_s1 + $0x60] sm:$0xff] (!%p168_p9)  ;;  %v230_v37 = vld [vmem:[%s1827_s1 + $0x68] sm:$0xff] (!%p168_p9)  ;;  %v231_v46 = vld [vmem:[%s1827_s1 + $0x70] sm:$0xff] (!%p168_p9)  ;;  %v1429_v25 = vmov (!%p168_p9), 1983009808   ;;  %vm1096_vm8 = vcmask (!%p168_p9), 1043459  }
  0x12   : > { %1264 = vmatprep.subr.bf16.mxu0 (!%p168_p9), %v1263_v5  ;;  %1292 = vmatprep.subr.bf16.mxu1 (!%p168_p9), %v1263_v5  ;;  %v1283_v43 = vpack.c.bf16 (!%p168_p9), %v230_v37, %v229_v36  ;;  %v232_v47 = vld [vmem:[%s1827_s1 + $0x78] sm:$0xff] (!%p168_p9)  ;;  %vm1098_vm9 = vcmask (!%p168_p9), 1044484   ;;  %s1185_s12 = sshll.u32 (!%p168_p9), %s191_s11, 3  ;;  %vm1100_vm10 = vcmask (!%p168_p9), 1045509   ;;  %vm1102_vm11 = vcmask (!%p168_p9), 1046534   ;;  %s1192_s13 = sshll.u32 (!%p168_p9), %s1477_s19, 7 }
  0x13   : > { %v1287_v53 = vpack.c.bf16 (!%p168_p9), %v232_v47, %v231_v46  ;;  %s193_s14 = scalar_lea.vmem (!%p168_p9), [#allocation2], %s1185_s12  ;;  %vm1104_vm12 = vcmask (!%p168_p9), 1047559   ;;  %s1784_s29 = scalar_lea.hbm (!%p168_p9), %s1830_s4, %s1192_s13 }
  0x14   : > { %s1122_s20 = sshll.u32 (!%p168_p9), %s193_s14, 4  ;;  %s1430_s5 = smov (!%p168_p9), [#allocation2]   ;;  %s1786_s20 = int_to_ptr.vmem [resolvable:$true] %s1122_s20 }
  0x15   : > { %s1840_s27 = smov (!%p195_p10, %s1186_s27), 15  ;;  %1266 = vmatpush3.bf16.msra.mxu0 %v1263_v5  ;;  %1300 = vmatpush3.bf16.msra.mxu1 %v1263_v5  ;;  %s1362_s19 = scalar_lea.vmem %s1786_s20, 128 }
  0x16   : > { %s1195_s10 = sshll.u32 %s1840_s27, 4  ;;  %1268 = vmatprep.subr.bf16.mxu0 %v1267_v8  ;;  %1293 = vmatprep.subr.bf16.mxu1 %v1267_v8  ;;  %s1426_s27 = smov 32  }
  0x17   : > { %s1526_s23 = scalar_lea.vmem %s1826_s0, %s1195_s10  ;;  %s1427_s10 = smov 64  }
  0x18   : > { %v1529_v9 = vld [vmem:[%s1526_s23 + $0x20] sm:$0xff]  ;;  %v1535_v11 = vld [vmem:[%s1526_s23 + $0x30] sm:$0xff]  ;;  %v202_v21 = vld [vmem:[%s1526_s23 + $0x8] sm:$0x1]  ;;  %p1363_p11 = scmp.ne.s32.totalorder %s1786_s20, %s1362_s19  ;;  %s1366_s6 = sshll.u32 %s1430_s5, 4  ;;  %s1367_s6 = int_to_ptr.vmem [resolvable:$false] %s1366_s6 }
  0x19   : > { %v1532_v10 = vld [vmem:[%s1526_s23] sm:$0xff]  ;;  %v244_v12 = vrot.slane %v1529_v9, 1  ;;  %v1540_v14 = vld [vmem:[%s1526_s23 + $0x10] sm:$0xff]  ;;  %v245_v15 = vrot.slane %v1535_v11, 1  ;;  %1270 = vmatpush3.bf16.msra.mxu0 %v1267_v8  ;;  %1301 = vmatpush3.bf16.msra.mxu1 %v1267_v8  ;;  %v276_v26 = vrot.slane %v1529_v9, 2  ;;  %v316_v32 = vrot.slane %v202_v21, 3  ;;  %p1369_p0 = scmp.lt.s32.totalorder %s1786_s20, %s1367_s6 }
  0x1a   : > { %v242_v13 = vrot.slane %v1532_v10, 1  ;;  %v243_v16 = vrot.slane %v1540_v14, 1  ;;  %v1547_v17 = vld [vmem:[%s1526_s23 + $0x40] sm:$0xff]  ;;  %v274_v19 = vrot.slane %v1532_v10, 2  ;;  %v275_v27 = vrot.slane %v1540_v14, 2  ;;  %1272 = vmatprep.subr.bf16.mxu0 %v1271_v24  ;;  %1294 = vmatprep.subr.bf16.mxu1 %v1271_v24  ;;  %v1610_v58 = vld [vmem:[%s1526_s23 + $0x50] sm:$0xff]  ;;  %p1364_p12 = pnand %p1363_p11, %p1494_p5 }
  0x1b   : > { %254 = vrot.lane.b32.xlu1 %v244_v12, %s1426_s27  ;;  %v246_v18 = vrot.slane %v1547_v17, 1  ;;  %v315_v31 = vrot.slane %v1532_v10, 3  ;;  %v204_v33 = vld [vmem:[%s1526_s23 + $0x18] sm:$0x1]  ;;  %v277_v35 = vrot.slane %v1535_v11, 2  ;;  %v318_v39 = vrot.slane %v1540_v14, 3 }
  0x1c   : > { %250 = vrot.lane.b32.xlu0 %v242_v13, %s1426_s27  ;;  %v319_v40 = vrot.slane %v204_v33, 3  ;;  %v208_v41 = vld [vmem:[%s1526_s23 + $0x38] sm:$0x1]  ;;  %v206_v42 = vld [vmem:[%s1526_s23 + $0x28] sm:$0x1]  ;;  %v278_v44 = vrot.slane %v1547_v17, 2  ;;  %p1365_p13 = pneg %p1364_p12 }
  0x1d   : > { %1274 = vmatpush3.bf16.msra.mxu0 %v1271_v24  ;;  %1302 = vmatpush3.bf16.msra.mxu1 %v1271_v24  ;;  %v317_v38 = vsel %vm314_vm0, %v315_v31, %v316_v32  ;;  %v324_v45 = vrot.slane %v1535_v11, 3  ;;  %v325_v49 = vrot.slane %v208_v41, 3  ;;  %v321_v50 = vrot.slane %v1529_v9, 3  ;;  %v210_v52 = vld [vmem:[%s1526_s23 + $0x48] sm:$0x1]  ;;  %v1617_v61 = vld [vmem:[%s1526_s23 + $0x60] sm:$0xff] }
  0x1e   : > { %1276 = vmatprep.subr.bf16.mxu0 %v1275_v28  ;;  %1295 = vmatprep.subr.bf16.mxu1 %v1275_v28  ;;  %v320_v48 = vsel %vm314_vm0, %v318_v39, %v319_v40  ;;  %v322_v51 = vrot.slane %v206_v42, 3  ;;  %v327_v56 = vrot.slane %v1547_v17, 3  ;;  %v328_v57 = vrot.slane %v210_v52, 3  ;;  %v1624_v0 = vld [vmem:[%s1526_s23 + $0x70] sm:$0xff]  ;;  %v212_v1 = vld [vmem:[%s1526_s23 + $0x58] sm:$0x1] }
  0x1f   : > { %256 = vrot.lane.b32.xlu1 %v245_v15, %s1426_s27  ;;  %v326_v54 = vsel %vm314_vm0, %v324_v45, %v325_v49  ;;  %v247_v59 = vrot.slane %v1610_v58, 1  ;;  %v279_v62 = vrot.slane %v1610_v58, 2  ;;  %v248_v63 = vrot.slane %v1617_v61, 1  ;;  %v216_v6 = vld [vmem:[%s1526_s23 + $0x78] sm:$0x1]  ;;  %s1368_s7 = scalar_lea.vmem %s1367_s6, 256 }
  0x20   : > { %252 = vrot.lane.b32.xlu0 %v243_v16, %s1426_s27  ;;  %v323_v55 = vsel %vm314_vm0, %v321_v50, %v322_v51  ;;  %v329_v60 = vsel %vm314_vm0, %v327_v56, %v328_v57  ;;  %v280_v2 = vrot.slane %v1617_v61, 2  ;;  %v249_v3 = vrot.slane %v1624_v0, 1  ;;  %v214_v7 = vld [vmem:[%s1526_s23 + $0x68] sm:$0x1]  ;;  %p1370_p1 = scmp.lt.s32.totalorder %s1368_s7, %s1362_s19 }
  0x21   : > { %1278 = vmatpush3.bf16.msra.mxu0 %v1275_v28  ;;  %1303 = vmatpush3.bf16.msra.mxu1 %v1275_v28  ;;  %v330_v4 = vrot.slane %v1610_v58, 3  ;;  %v331_v5 = vrot.slane %v212_v1, 3  ;;  %v281_v8 = vrot.slane %v1624_v0, 2  ;;  %v336_v12 = vrot.slane %v1624_v0, 3 }
  0x22   : > { %1280 = vmatprep.subr.bf16.mxu0 %v1279_v34  ;;  %1296 = vmatprep.subr.bf16.mxu1 %v1279_v34  ;;  %v337_v15 = vrot.slane %v216_v6, 3  ;;  %v333_v16 = vrot.slane %v1617_v61, 3  ;;  %p1371_p2 = por %p1370_p1, %p1369_p0 }
  0x23   : > { %258 = vrot.lane.b32.xlu1 %v246_v18, %s1426_s27  ;;  %v332_v13 = vsel %vm314_vm0, %v330_v4, %v331_v5  ;;  %v334_v18 = vrot.slane %v214_v7, 3 }
  0x24   : > { %282 = vrot.lane.b32.xlu0 %v274_v19, %s1427_s10  ;;  %v338_v19 = vsel %vm314_vm0, %v336_v12, %v337_v15  ;;  %p1372_p3 = pnand %p1371_p2, %p1365_p13 }
  0x25   : > { %1282 = vmatpush3.bf16.msra.mxu0 %v1279_v34  ;;  %1304 = vmatpush3.bf16.msra.mxu1 %v1279_v34  ;;  %v335_v20 = vsel %vm314_vm0, %v333_v16, %v334_v18 }
  0x26   : > { %1284 = vmatprep.subr.bf16.mxu0 %v1283_v43  ;;  %1297 = vmatprep.subr.bf16.mxu1 %v1283_v43 }
  0x27   : > { %286 = vrot.lane.b32.xlu1 %v276_v26, %s1427_s10  ;;  %v400_v26 = vunpack.c.l.s4 %v1429_v25 }
  0x28   : > { %284 = vrot.lane.b32.xlu0 %v275_v27, %s1427_s10  ;;  %v402_v27 = vlaneseq }
  0x29   : > { %1286 = vmatpush3.bf16.msra.mxu0 %v1283_v43  ;;  %1305 = vmatpush3.bf16.msra.mxu1 %v1283_v43  ;;  %v401_v30 = vunpack.c.0.s8 %v400_v26 }
  0x2a   : > { %1288 = vmatprep.subr.bf16.mxu0 %v1287_v53  ;;  %1298 = vmatprep.subr.bf16.mxu1 %v1287_v53  ;;  %v1646_v31 = vshrl.u32 %v402_v27, 7 }
  0x2b   : > { %339 = vrot.lane.b32.xlu1 %v317_v38, %s1428_s30 }
  0x2c   : > { %288 = vrot.lane.b32.xlu0 %v277_v35, %s1427_s10  ;;  %v1649_v34 = vsub.s32 %v401_v30, %v1646_v31 }
  0x2d   : > { %1290 = vmatpush3.bf16.msra.mxu0 %v1287_v53  ;;  %1306 = vmatpush3.bf16.msra.mxu1 %v1287_v53 }
  0x2f   : > { %341 = vrot.lane.b32.xlu1 %v320_v48, %s1428_s30 }
  0x30   : > { %290 = vrot.lane.b32.xlu0 %v278_v44, %s1427_s10 }
  0x33   : > { %345 = vrot.lane.b32.xlu1 %v326_v54, %s1428_s30 }
  0x34   : > { %343 = vrot.lane.b32.xlu0 %v323_v55, %s1428_s30 }
  0x37   : > { %347 = vrot.lane.b32.xlu1 %v329_v60, %s1428_s30 }
  0x38   : > { %260 = vrot.lane.b32.xlu0 %v247_v59, %s1426_s27 }
  0x3b   : > { %292 = vrot.lane.b32.xlu1 %v279_v62, %s1427_s10 }
  0x3c   : > { %262 = vrot.lane.b32.xlu0 %v248_v63, %s1426_s27 }
  0x3f   : > { %294 = vrot.lane.b32.xlu1 %v280_v2, %s1427_s10 }
  0x40   : > { %264 = vrot.lane.b32.xlu0 %v249_v3, %s1426_s27 }
  0x43   : > { %296 = vrot.lane.b32.xlu1 %v281_v8, %s1427_s10 }
  0x44   : > { %349 = vrot.lane.b32.xlu0 %v332_v13, %s1428_s30 }
  0x47   : > { %353 = vrot.lane.b32.xlu1 %v338_v19, %s1428_s30 }
  0x48   : > { %351 = vrot.lane.b32.xlu0 %v335_v20, %s1428_s30  ;;  %s1109_s30 = scalar_lea.sflag [#allocation3], %s191_s11 }
  0x8d   : > { %v255_v21 = vpop.permute.xlu1 %254 }
  0x8e   : > { %v251_v22 = vpop.permute.xlu0 %250  ;;  %v366_v50 = vsel %vm363_vm1, %v1529_v9, %v255_v21 }
  0x8f   : > { %v364_v35 = vsel %vm363_vm1, %v1532_v10, %v251_v22 }
  0x91   : > { %v257_v23 = vpop.permute.xlu1 %256 }
  0x92   : > { %v253_v24 = vpop.permute.xlu0 %252  ;;  %v367_v51 = vsel %vm363_vm1, %v1535_v11, %v257_v23 }
  0x93   : > { %v365_v42 = vsel %vm363_vm1, %v1540_v14, %v253_v24 }
  0x95   : > { %v259_v28 = vpop.permute.xlu1 %258 }
  0x96   : > { %v283_v29 = vpop.permute.xlu0 %282  ;;  %v368_v16 = vsel %vm363_vm1, %v1547_v17, %v259_v28 }
  0x97   : > { %v373_v36 = vsel %vm372_vm2, %v364_v35, %v283_v29 }
  0x99   : > { %v287_v32 = vpop.permute.xlu1 %286 }
  0x9a   : > { %v285_v33 = vpop.permute.xlu0 %284  ;;  %v375_v14 = vsel %vm372_vm2, %v366_v50, %v287_v32 }
  0x9b   : > { %v374_v43 = vsel %vm372_vm2, %v365_v42, %v285_v33 }
  0x9d   : > { %v340_v37 = vpop.permute.xlu1 %339 }
  0x9e   : > { %v289_v38 = vpop.permute.xlu0 %288  ;;  %v382_v39 = vsel %vm381_vm3, %v373_v36, %v340_v37 }
  0x9f   : > { %v398_v40 = vcombine.high %v382_v39, %v382_v39  ;;  %v405_v41 = vrot.slane %v382_v39, %v1649_v34  ;;  %v376_v53 = vsel %vm372_vm2, %v367_v51, %v289_v38 }
  0xa1   : > { %v413_v44 = vcombine.high %v405_v41, %v405_v41  ;;  %v342_v45 = vpop.permute.xlu1 %341  ;;  %v412_v10 = vrot.slane %v398_v40, %v1649_v34 }
  0xa2   : > { %v291_v46 = vpop.permute.xlu0 %290  ;;  %v383_v47 = vsel %vm381_vm3, %v374_v43, %v342_v45 }
  0xa3   : > { %v414_v48 = vcombine.high %v383_v47, %v383_v47  ;;  %v421_v49 = vrot.slane %v383_v47, %v1649_v34  ;;  %v532_v52 = vcombine.low %v405_v41, %v413_v44  ;;  %v377_v20 = vsel %vm372_vm2, %v368_v16, %v291_v46 }
  0xa5   : > { %v346_v54 = vpop.permute.xlu1 %345  ;;  %v533_v56 = vcombine.low %v412_v10, %v421_v49  ;;  %v428_v57 = vrot.slane %v414_v48, %v1649_v34  ;;  %v429_v59 = vcombine.high %v421_v49, %v421_v49  ;;  %v540_v2 = vrot.slane %v532_v52, %v1649_v34 }
  0xa6   : > { %v344_v55 = vpop.permute.xlu0 %343  ;;  %v385_v60 = vsel %vm381_vm3, %v376_v53, %v346_v54 }
  0xa7   : > { %v384_v62 = vsel %vm381_vm3, %v375_v14, %v344_v55  ;;  %v446_v63 = vcombine.high %v385_v60, %v385_v60  ;;  %v453_v9 = vrot.slane %v385_v60, %v1649_v34  ;;  %v547_v3 = vrot.slane %v533_v56, %v1649_v34 }
  0xa8   : > { %v430_v1 = vcombine.high %v384_v62, %v384_v62  ;;  %v437_v11 = vrot.slane %v384_v62, %v1649_v34  ;;  %v549_v12 = vcombine.low %v429_v59, %v428_v57 }
  0xa9   : > { %v460_v4 = vrot.slane %v446_v63, %v1649_v34  ;;  %v461_v5 = vcombine.high %v453_v9, %v453_v9  ;;  %v348_v7 = vpop.permute.xlu1 %347  ;;  %v548_v15 = vcombine.low %v540_v2, %v547_v3 }
  0xaa   : > { %v444_v6 = vrot.slane %v430_v1, %v1649_v34  ;;  %v261_v8 = vpop.permute.xlu0 %260  ;;  %v445_v13 = vcombine.high %v437_v11, %v437_v11  ;;  %v386_v22 = vsel %vm381_vm3, %v377_v20, %v348_v7  ;;  %v557_v27 = vrot.slane %v549_v12, %v1649_v34 }
  0xab   : > { %v567_v19 = vcombine.low %v461_v5, %v460_v4  ;;  %1250 = vmatprep.mubr.f32.mxu0 %v548_v15  ;;  %v469_v17 = vrot.slane %v386_v22, %v1649_v34  ;;  %v462_v35 = vcombine.high %v386_v22, %v386_v22  ;;  %v369_v37 = vsel %vm363_vm1, %v1610_v58, %v261_v8 }
  0xac   : > { %v566_v18 = vcombine.low %v444_v6, %v453_v9  ;;  %v550_v21 = vcombine.low %v437_v11, %v445_v13  ;;  %v1189_v13 = vld [vmem:[%s1828_s2] ss:$0 sm:$0xff] }
  0xad   : > { %v293_v23 = vpop.permute.xlu1 %292  ;;  %v581_v26 = vrot.slane %v567_v19, %v1649_v34  ;;  %v477_v36 = vcombine.high %v469_v17, %v469_v17  ;;  %v476_v42 = vrot.slane %v462_v35, %v1649_v34 }
  0xae   : > { %v263_v24 = vpop.permute.xlu0 %262  ;;  %v574_v25 = vrot.slane %v566_v18, %v1649_v34  ;;  %v564_v29 = vrot.slane %v550_v21, %v1649_v34  ;;  %v378_v38 = vsel %vm372_vm2, %v369_v37, %v293_v23 }
  0xaf   : > { %v583_v45 = vcombine.low %v469_v17, %v477_v36  ;;  %v370_v46 = vsel %vm363_vm1, %v1617_v61, %v263_v24 }
  0xb0   : > { %v582_v30 = vcombine.low %v574_v25, %v581_v26  ;;  %v565_v28 = vcombine.low %v557_v27, %v564_v29 }
  0xb1   : > { %v295_v32 = vpop.permute.xlu1 %294  ;;  %v591_v56 = vrot.slane %v583_v45, %v1649_v34 }
  0xb2   : > { %1253 = vmatprep.mubr.f32.mxu1 %v582_v30  ;;  %v265_v33 = vpop.permute.xlu0 %264  ;;  %1251 = vmatmul.mubr.f32.vlgmr.msra.gmra.mrb[0].mxu0 %v565_v28  ;;  %v379_v58 = vsel %vm372_vm2, %v370_v46, %v295_v32 }
  0xb3   : > { %v371_v47 = vsel %vm363_vm1, %v1624_v0, %v265_v33 }
  0xb5   : > { %v297_v39 = vpop.permute.xlu1 %296 }
  0xb6   : > { %v350_v40 = vpop.permute.xlu0 %349  ;;  %v380_v10 = vsel %vm372_vm2, %v371_v47, %v297_v39 }
  0xb7   : > { %v387_v41 = vsel %vm381_vm3, %v378_v38, %v350_v40 }
  0xb8   : > { %v478_v43 = vcombine.high %v387_v41, %v387_v41  ;;  %v485_v44 = vrot.slane %v387_v41, %v1649_v34 }
  0xb9   : > { %v354_v49 = vpop.permute.xlu1 %353 }
  0xba   : > { %v584_v48 = vcombine.low %v476_v42, %v485_v44  ;;  %v352_v50 = vpop.permute.xlu0 %351  ;;  %v492_v51 = vrot.slane %v478_v43, %v1649_v34  ;;  %v493_v52 = vcombine.high %v485_v44, %v485_v44  ;;  %v389_v14 = vsel %vm381_vm3, %v380_v10, %v354_v49  ;;  %v1190_v49 = vld [vmem:[%s1829_s3] ss:$0 sm:$0xff] }
  0xbb   : > { %v388_v53 = vsel %vm381_vm3, %v379_v58, %v352_v50  ;;  %v510_v54 = vcombine.high %v389_v14, %v389_v14  ;;  %v517_v61 = vrot.slane %v389_v14, %v1649_v34  ;;  %vm1727_vm4 = vcmp.lt.s32.totalorder %v1646_v31, %v1190_v49 }
  0xbc   : > { %v494_v55 = vcombine.high %v388_v53, %v388_v53  ;;  %v501_v0 = vrot.slane %v388_v53, %v1649_v34  ;;  %v598_v57 = vrot.slane %v584_v48, %v1649_v34  ;;  %v600_v63 = vcombine.low %v493_v52, %v492_v51 }
  0xbd   : > { %v524_v59 = vrot.slane %v510_v54, %v1649_v34  ;;  %v525_v60 = vcombine.high %v517_v61, %v517_v61 }
  0xbe   : > { %v508_v62 = vrot.slane %v494_v55, %v1649_v34  ;;  %v509_v9 = vcombine.high %v501_v0, %v501_v0  ;;  %v599_v1 = vcombine.low %v591_v56, %v598_v57  ;;  %v608_v6 = vrot.slane %v600_v63, %v1649_v34 }
  0xbf   : > { %v618_v11 = vcombine.low %v525_v60, %v524_v59 }
  0xc0   : > { %v617_v2 = vcombine.low %v508_v62, %v517_v61  ;;  %v601_v3 = vcombine.low %v501_v0, %v509_v9  ;;  %1254 = vmatmul.mubr.f32.vlgmr.msra.gmra.mrb[0].mxu1 %v599_v1 }
  0xc1   : > { %v632_v5 = vrot.slane %v618_v11, %v1649_v34 }
  0xc2   : > { %v625_v4 = vrot.slane %v617_v2, %v1649_v34  ;;  %v615_v7 = vrot.slane %v601_v3, %v1649_v34 }
  0xc4   : > { %v633_v8 = vcombine.low %v625_v4, %v632_v5  ;;  %v616_v12 = vcombine.low %v608_v6, %v615_v7 }
  0xc6   : > { %1256 = vmatprep.mubr.f32.mxu1 %v616_v12 }
  0xc7   : > { %1257 = vmatmul.mubr.f32.gmra.mrb[2].mxu1 %v633_v8 }
 0x185   : > { %v1252_v15 = vpop.f32.mrb[0].mxu0 }
 0x186   : > { %v712_v16 = vadd.f32 %v1252_v15, %v1189_v13  ;;  %v706_v18 = vpop.f32.mrb[1].mxu0 }
 0x187   : > { %v707_v19 = vadd.f32 %v1189_v13, %v706_v18 }
 0x188   : > { %v742_v20 = vmul.f32 0.70710677, %v712_v16  ;;  %v736_v27 = vmul.f32 0.5, %v712_v16 }
 0x189   : > { %v741_v21 = vmul.f32 0.70710677, %v707_v19  ;;  %v735_v17 = vmul.f32 0.5, %v707_v19 }
 0x18a   : > { %1350 = verf.f32 %v742_v20 }
 0x18b   : > { %1352 = verf.f32 %v741_v21 }
 0x193   : > { %v1255_v22 = vpop.f32.mrb[0].mxu1 }
 0x194   : > { %v1351_v23 = vpop.eup %1350  ;;  %v722_v24 = vadd.f32 %v1255_v22, %v1189_v13  ;;  %v716_v25 = vpop.f32.mrb[1].mxu1 }
 0x195   : > { %v1353_v26 = vpop.eup %1352  ;;  %v754_v29 = vadd.f32 1.0, %v1351_v23  ;;  %v717_v30 = vadd.f32 %v1189_v13, %v716_v25 }
 0x196   : > { %v753_v28 = vadd.f32 1.0, %v1353_v26  ;;  %v744_v32 = vmul.f32 0.70710677, %v722_v24  ;;  %v738_v60 = vmul.f32 0.5, %v722_v24 }
 0x197   : > { %v760_v33 = vmul.f32 %v754_v29, %v736_v27  ;;  %v743_v35 = vmul.f32 0.70710677, %v717_v30  ;;  %v737_v1 = vmul.f32 0.5, %v717_v30 }
 0x198   : > { %v759_v36 = vmul.f32 %v753_v28, %v735_v17  ;;  %1354 = verf.f32 %v744_v32 }
 0x199   : > { %v788_v37 = vcombine.high %v760_v33, %v760_v33  ;;  %1356 = verf.f32 %v743_v35  ;;  %v795_v38 = vrot.slane %v760_v33, %v1649_v34 }
 0x19a   : > { %v771_v39 = vcombine.high %v759_v36, %v759_v36  ;;  %v778_v40 = vrot.slane %v759_v36, %v1649_v34  ;;  %v1258_v41 = vpop.f32.mrb[2].mxu1 }
 0x19b   : > { %v732_v42 = vadd.f32 %v1258_v41, %v1189_v13  ;;  %v726_v43 = vpop.f32.mrb[3].mxu1  ;;  %v802_v47 = vrot.slane %v788_v37, %v1649_v34  ;;  %v803_v10 = vcombine.high %v795_v38, %v795_v38 }
 0x19c   : > { %v785_v44 = vrot.slane %v771_v39, %v1649_v34  ;;  %v786_v45 = vcombine.high %v778_v40, %v778_v40  ;;  %v1717_v46 = vadd.f32 %v1189_v13, %v726_v43 }
 0x19d   : > { %v746_v58 = vmul.f32 0.70710677, %v732_v42  ;;  %v804_v54 = vcombine.high %v802_v47, %v802_v47  ;;  %v913_v0 = vrot.slane %v803_v10, %v1649_v34  ;;  %v740_v23 = vmul.f32 0.5, %v732_v42 }
 0x19e   : > { %v787_v48 = vcombine.high %v785_v44, %v785_v44  ;;  %v883_v50 = vcombine.low %v778_v40, %v786_v45  ;;  %v745_v51 = vmul.f32 0.70710677, %v1717_v46  ;;  %v897_v14 = vrot.slane %v785_v44, %v1649_v34 }
 0x19f   : > { %1358 = verf.f32 %v746_v58  ;;  %v915_v11 = vcombine.low %v802_v47, %v804_v54  ;;  %v739_v45 = vmul.f32 0.5, %v1717_v46 }
 0x1a0   : > { %v890_v52 = vrot.slane %v883_v50, %v1649_v34  ;;  %v899_v53 = vcombine.low %v787_v48, %v795_v38  ;;  %1360 = verf.f32 %v745_v51 }
 0x1a1   : > { %v922_v22 = vrot.slane %v915_v11, %v1649_v34 }
 0x1a2   : > { %v1355_v55 = vpop.eup %1354  ;;  %v898_v56 = vcombine.low %v890_v52, %v897_v14  ;;  %v906_v57 = vrot.slane %v899_v53, %v1649_v34 }
 0x1a3   : > { %v1357_v59 = vpop.eup %1356  ;;  %v756_v62 = vadd.f32 1.0, %v1355_v55 }
 0x1a4   : > { %v914_v63 = vcombine.low %v906_v57, %v913_v0  ;;  %v1019_v9 = vsel %vm1727_vm4, %v898_v56, -inf  ;;  %v755_v31 = vadd.f32 1.0, %v1357_v59 }
 0x1a5   : > { %v1028_v2 = vsel %vm1027_vm5, %v1019_v9, -inf  ;;  %v762_v3 = vmul.f32 %v756_v62, %v738_v60 }
 0x1a6   : > { %v1020_v4 = vsel %vm1727_vm4, %v914_v63, -inf  ;;  %v1029_v5 = vrot.slane %v1028_v2, 4  ;;  %v761_v6 = vmul.f32 %v755_v31, %v737_v1 }
 0x1a7   : > { %v1035_v7 = vsel %vm1027_vm5, %v1020_v4, -inf  ;;  %v822_v8 = vcombine.high %v762_v3, %v762_v3  ;;  %v829_v12 = vrot.slane %v762_v3, %v1649_v34 }
 0x1a8   : > { %v1030_v13 = vmax.f32 %v1028_v2, %v1029_v5  ;;  %v1036_v15 = vrot.slane %v1035_v7, 4  ;;  %v805_v16 = vcombine.high %v761_v6, %v761_v6  ;;  %v812_v18 = vrot.slane %v761_v6, %v1649_v34 }
 0x1a9   : > { %v1359_v19 = vpop.eup %1358  ;;  %v836_v20 = vrot.slane %v822_v8, %v1649_v34  ;;  %v837_v21 = vcombine.high %v829_v12, %v829_v12 }
 0x1aa   : > { %v1031_v24 = vrot.slane %v1030_v13, 2  ;;  %v1037_v25 = vmax.f32 %v1035_v7, %v1036_v15  ;;  %v819_v26 = vrot.slane %v805_v16, %v1649_v34  ;;  %v820_v27 = vcombine.high %v812_v18, %v812_v18  ;;  %v1361_v29 = vpop.eup %1360 }
 0x1ab   : > { %v947_v30 = vcombine.low %v829_v12, %v837_v21  ;;  %v961_v17 = vrot.slane %v836_v20, %v1649_v34  ;;  %v929_v28 = vrot.slane %v812_v18, %v1649_v34  ;;  %v758_v32 = vadd.f32 1.0, %v1359_v19 }
 0x1ac   : > { %v1032_v33 = vmax.f32 %v1030_v13, %v1031_v24  ;;  %v1038_v35 = vrot.slane %v1037_v25, 2  ;;  %v821_v36 = vcombine.high %v819_v26, %v819_v26  ;;  %v931_v37 = vcombine.low %v820_v27, %v819_v26 }
 0x1ad   : > { %v954_v38 = vrot.slane %v947_v30, %v1649_v34  ;;  %v930_v39 = vcombine.low %v922_v22, %v929_v28  ;;  %v764_v40 = vmul.f32 %v758_v32, %v740_v23  ;;  %v757_v41 = vadd.f32 1.0, %v1361_v29 }
 0x1ae   : > { %v1033_v42 = vrot.slane %v1032_v33, 1  ;;  %v938_v43 = vrot.slane %v931_v37, %v1649_v34  ;;  %v945_v44 = vrot.slane %v821_v36, %v1649_v34  ;;  %v1039_v49 = vmax.f32 %v1037_v25, %v1038_v35 }
 0x1af   : > { %v962_v47 = vcombine.low %v954_v38, %v961_v17  ;;  %v1021_v58 = vsel %vm1727_vm4, %v930_v39, -inf  ;;  %v856_v10 = vcombine.high %v764_v40, %v764_v40  ;;  %v863_v48 = vrot.slane %v764_v40, %v1649_v34 }
 0x1b0   : > { %v946_v50 = vcombine.low %v938_v43, %v945_v44  ;;  %v1042_v51 = vsel %vm1027_vm5, %v1021_v58, -inf  ;;  %v763_v52 = vmul.f32 %v757_v41, %v739_v45  ;;  %v1034_v55 = vmax.f32 %v1032_v33, %v1033_v42 }
 0x1b1   : > { %v1023_v14 = vsel %vm1727_vm4, %v962_v47, -inf  ;;  %v1043_v53 = vrot.slane %v1042_v51, 4  ;;  %v870_v54 = vrot.slane %v856_v10, %v1649_v34  ;;  %v871_v46 = vcombine.high %v863_v48, %v863_v48 }
 0x1b2   : > { %v1056_v0 = vsel %vm1027_vm5, %v1023_v14, -inf  ;;  %v1022_v56 = vsel %vm1727_vm4, %v946_v50, -inf  ;;  %v838_v57 = vcombine.high %v836_v20, %v836_v20  ;;  %v839_v31 = vcombine.high %v763_v52, %v763_v52 }
 0x1b3   : > { %v1057_v59 = vrot.slane %v1056_v0, 4  ;;  %v1044_v60 = vmax.f32 %v1042_v51, %v1043_v53  ;;  %v1049_v62 = vsel %vm1027_vm5, %v1022_v56, -inf  ;;  %v872_v63 = vcombine.high %v870_v54, %v870_v54 }
 0x1b4   : > { %v1050_v9 = vrot.slane %v1049_v62, 4  ;;  %v995_v1 = vcombine.low %v871_v46, %v870_v54  ;;  %v846_v11 = vrot.slane %v763_v52, %v1649_v34  ;;  %v1040_v5 = vrot.slane %v1039_v49, 1 }
 0x1b5   : > { %v1058_v2 = vmax.f32 %v1056_v0, %v1057_v59  ;;  %v1045_v3 = vrot.slane %v1044_v60, 2  ;;  %v1009_v4 = vrot.slane %v872_v63, %v1649_v34  ;;  %v853_v8 = vrot.slane %v839_v31, %v1649_v34 }
 0x1b6   : > { %v1051_v6 = vmax.f32 %v1049_v62, %v1050_v9  ;;  %v1002_v7 = vrot.slane %v995_v1, %v1649_v34  ;;  %v854_v12 = vcombine.high %v846_v11, %v846_v11  ;;  %v963_v16 = vcombine.low %v838_v57, %v846_v11 }
 0x1b7   : > { %v1059_v13 = vrot.slane %v1058_v2, 2  ;;  %v1046_v15 = vmax.f32 %v1044_v60, %v1045_v3  ;;  %v1041_v18 = vmax.f32 %v1039_v49, %v1040_v5  ;;  %v855_v21 = vcombine.high %v853_v8, %v853_v8 }
 0x1b8   : > { %v1052_v19 = vrot.slane %v1051_v6, 2  ;;  %v1010_v20 = vcombine.low %v1002_v7, %v1009_v4  ;;  %v977_v22 = vrot.slane %v854_v12, %v1649_v34  ;;  %v970_v24 = vrot.slane %v963_v16, %v1649_v34 }
 0x1b9   : > { %v1047_v23 = vrot.slane %v1046_v15, 1  ;;  %v1060_v25 = vmax.f32 %v1058_v2, %v1059_v13  ;;  %v1093_v26 = vsel %vm1092_vm6, %v1041_v18, %v1034_v55  ;;  %v979_v27 = vcombine.low %v853_v8, %v855_v21 }
 0x1ba   : > { %v1026_v29 = vsel %vm1727_vm4, %v1010_v20, -inf  ;;  %v1053_v30 = vmax.f32 %v1051_v6, %v1052_v19  ;;  %v978_v28 = vcombine.low %v970_v24, %v977_v22  ;;  %v993_v35 = vrot.slane %v863_v48, %v1649_v34 }
 0x1bb   : > { %v1048_v17 = vmax.f32 %v1046_v15, %v1047_v23  ;;  %v1061_v32 = vrot.slane %v1060_v25, 1  ;;  %v1077_v33 = vsel %vm1027_vm5, %v1026_v29, -inf  ;;  %v986_v36 = vrot.slane %v979_v27, %v1649_v34 }
 0x1bc   : > { %v1054_v37 = vrot.slane %v1053_v30, 1  ;;  %v1078_v38 = vrot.slane %v1077_v33, 4  ;;  %v1024_v39 = vsel %vm1727_vm4, %v978_v28, -inf }
 0x1bd   : > { %v1095_v40 = vsel %vm1094_vm7, %v1048_v17, %v1093_v26  ;;  %v994_v41 = vcombine.low %v986_v36, %v993_v35  ;;  %v1063_v42 = vsel %vm1027_vm5, %v1024_v39, -inf  ;;  %v1062_v47 = vmax.f32 %v1060_v25, %v1061_v32 }
 0x1be   : > { %v1055_v43 = vmax.f32 %v1053_v30, %v1054_v37  ;;  %v1079_v44 = vmax.f32 %v1077_v33, %v1078_v38  ;;  %v1064_v45 = vrot.slane %v1063_v42, 4 }
 0x1bf   : > { %v1025_v58 = vsel %vm1727_vm4, %v994_v41, -inf }
 0x1c0   : > { %v1097_v34 = vsel %vm1096_vm8, %v1055_v43, %v1095_v40  ;;  %v1065_v10 = vmax.f32 %v1063_v42, %v1064_v45  ;;  %v1070_v48 = vsel %vm1027_vm5, %v1025_v58, -inf  ;;  %v1080_v49 = vrot.slane %v1079_v44, 2 }
 0x1c1   : > { %v1099_v50 = vsel %vm1098_vm9, %v1062_v47, %v1097_v34  ;;  %v1071_v51 = vrot.slane %v1070_v48, 4 }
 0x1c2   : > { %v1066_v52 = vrot.slane %v1065_v10, 2  ;;  %v1081_v54 = vmax.f32 %v1079_v44, %v1080_v49 }
 0x1c3   : > { %v1072_v14 = vmax.f32 %v1070_v48, %v1071_v51 }
 0x1c4   : > { %v1067_v53 = vmax.f32 %v1065_v10, %v1066_v52  ;;  %v1082_v56 = vrot.slane %v1081_v54, 1 }
 0x1c5   : > { %v1073_v46 = vrot.slane %v1072_v14, 2 }
 0x1c6   : > { %v1068_v55 = vrot.slane %v1067_v53, 1  ;;  %v1083_v62 = vmax.f32 %v1081_v54, %v1082_v56 }
 0x1c7   : > { %v1074_v0 = vmax.f32 %v1072_v14, %v1073_v46 }
 0x1c8   : > { %v1069_v61 = vmax.f32 %v1067_v53, %v1068_v55 }
 0x1c9   : > { %v1075_v57 = vrot.slane %v1074_v0, 1 }
 0x1ca   : > { %v1101_v59 = vsel %vm1100_vm10, %v1069_v61, %v1099_v50 }
 0x1cb   : > { %v1076_v60 = vmax.f32 %v1074_v0, %v1075_v57 }
 0x1cd   : > { %v1103_v63 = vsel %vm1102_vm11, %v1076_v60, %v1101_v59 }
 0x1ce   : > { %v1105_v9 = vsel %vm1104_vm12, %v1083_v62, %v1103_v63 }
 0x1cf   : > { %1107 = vst [vmem:[%s193_s14] sm:$0xff] %v1105_v9 }
 0x1d0   : > { %1375 = shalt.err (!%p1372_p3)
}
 0x1d1   : > { %s1376_s8 = scalar_lea.hbm %s1784_s29, 128  ;;  %s1380_s9 = scalar_lea.hbm %s1830_s4, 256 }
 0x1d2   : > { %p1377_p4 = scmp.ne.s32.totalorder %s1784_s29, %s1376_s8  ;;  %p1381_p9 = scmp.lt.u32.totalorder %s1784_s29, %s1830_s4 }
 0x1d3   : > { %p1382_p10 = scmp.lt.u32.totalorder %s1380_s9, %s1376_s8  ;;  %p1384_p12 = scmp.lt.u32.totalorder %s1376_s8, %s1784_s29 }
 0x1d4   : > { %p1378_p7 = pnand %p1377_p4, %p1494_p5 }
 0x1d5   : > { %p1383_p11 = por %p1382_p10, %p1381_p9 }
 0x1d6   : > { %p1379_p8 = pneg %p1378_p7 }
 0x1d7   : > { %p1385_p13 = por %p1384_p12, %p1383_p11 }
 0x1d9   : > { %p1386_p0 = pnand %p1385_p13, %p1379_p8 }
 0x1db   : > { %1389 = shalt.err (!%p1386_p0)
}
 0x1dc   : > { %1307 = dma.vmem_to_hbm [thread:$0]  (%p1494_p5), %s1786_s20, 128, %s1784_s29, %s1109_s30  }
 0x1dd PF: > { %p1313_p1 = scmp.ge.s32.totalorder %s1424_s18, 2  ;;  %s1134_s12 = sand.u32 1, %s1412_s15  }
 0x1de   : > { %s1135_s13 = scalar_lea.sflag [#allocation3], %s1134_s12 }
 0x1df   : > { %p1310_p2 = pnand %p1313_p1, %p1498_p6 }
 0x1e1   : > { %1407 = dma.done.wait (!%p1310_p2), %s1135_s13, 128  }
 0x1e2   : > { %1409 = vsyncadd (!%p1310_p2), %s1135_s13, 4294967168  ;;  %p14_p3 = scmp.ge.s32.totalorder %s1481_s21, 4   ;;  %s1835_s15 = smov %s1416_s16 }
 0x1e3   : > { %s1836_s16 = smov %s1420_s17  ;;  %s1837_s17 = smov %s1492_s24 }
 0x1e4   : > { %s1838_s18 = smov %s1481_s21  ;;  %16 = sbr.rel (!%p14_p3) target bundleno = 3 (0x3), region = 71 }
 0x1eb   :  { %1140 = vsyncpa [#allocation3], 1 }
 0x1ec   :  { %1142 = vsyncpa [#allocation3 + $0x1], 1 }

</bundles_post_ra>
